<compile_context>
chip_gen: v7x
topology: tpu7x:2x2x1
jax: 0.10.0
libtpu: 0.0.40
codegen_flags: <defaults>
</compile_context>

<pallas_src>
import functools

import jax
import jax.numpy as jnp
from jax import lax
from jax.experimental import pallas as pl
from jax.experimental.pallas import tpu as pltpu

EPS = 1e-3   # BatchNorm eps from the module
CPAD = 128   # every channel dim is padded to one full lane tile


def _bn_relu(acc, g, bt):
    """BatchNorm1d (training mode, batch stats) + ReLU on a flat (M, C) tile.

    One-pass stats: sum(x) and sum(x*x) are independent cross-sublane
    reductions; var = E[x^2] - mean^2 (EPS=1e-3 floors the denominator, so the
    mild cancellation is harmless at these magnitudes); the centering is folded
    into the affine so the normalize is a single FMA per element.
    """
    inv_m = 1.0 / acc.shape[0]
    mean = jnp.sum(acc, axis=0, keepdims=True) * inv_m
    ex2 = jnp.sum(acc * acc, axis=0, keepdims=True) * inv_m
    var = ex2 - mean * mean
    s = g * lax.rsqrt(var + EPS)                       # folded scale (1, C)
    return jnp.maximum(acc * s + (bt - mean * s), 0.0)


def _conv_taps(x3, wref, woff, K, Lout):
    """Conv1d as K accumulating per-tap MXU dots on the flat (N*Lout, C) layout.

    x3:   (N, Lin, C) value (channels zero-padded to CPAD lanes).
    wref: packed weight ref; tap k lives at rows [woff + k*C, woff + (k+1)*C).
    """
    N, _, C = x3.shape
    acc = None
    for k in range(K):                                  # K is small and static
        xk = x3[:, k:k + Lout, :].reshape(N * Lout, C)
        wk = wref[woff + k * C: woff + (k + 1) * C, :]
        d = jnp.dot(xk, wk, preferred_element_type=jnp.float32)
        acc = d if acc is None else acc + d
    return acc                                          # (N*Lout, C)


def blockfcn_kernel(xs1_ref, w1_ref, wpk_ref, out_ref, *, dims):
    """Fused conv->bn->relu x3 + global average pool.

    xs1_ref: (N*L1, CPAD)  layer-1 im2col'ed input (prepared on the host).
    w1_ref:  (CPAD, CPAD)  layer-1 weight (K1*Cin real rows, Cout1 real cols).
    wpk_ref: ((K2+K3)*CPAD + 6, CPAD) packed [w2 taps | w3 taps | g/b x 3].
    out_ref: (N, CPAD)     pooled output (Cout3 real lanes).
    """
    N, L1, L2, L3, K2, K3 = dims
    C = CPAD
    off3 = K2 * C
    offv = off3 + K3 * C
    gbt = wpk_ref[offv:offv + 6, :]                     # (6,C): g1 b1 g2 b2 g3 b3

    # ---- layer 1: single MXU dot (im2col done on the host) ---------------
    acc1 = jnp.dot(xs1_ref[...], w1_ref[...], preferred_element_type=jnp.float32)
    y1 = _bn_relu(acc1, gbt[0:1], gbt[1:2])             # (N*L1, C)

    # ---- layer 2: K2 accumulating per-tap dots ----------------------------
    acc2 = _conv_taps(y1.reshape(N, L1, C), wpk_ref, 0, K2, L2)
    y2 = _bn_relu(acc2, gbt[2:3], gbt[3:4])             # (N*L2, C)

    # ---- layer 3: K3 accumulating per-tap dots ----------------------------
    acc3 = _conv_taps(y2.reshape(N, L2, C), wpk_ref, off3, K3, L3)
    y3 = _bn_relu(acc3, gbt[4:5], gbt[5:6])             # (N*L3, C)

    # ---- global average pool: one pooling matmul + one dense store --------
    # pool[n, r] = 1/L3 if n*L3 <= r < (n+1)*L3 else 0 (built from iotas; the
    # MXU is idle at this point, and the single (N,128) store is lane-dense).
    row = lax.broadcasted_iota(jnp.int32, (N, N * L3), 0)
    col = lax.broadcasted_iota(jnp.int32, (N, N * L3), 1)
    sel = (col >= row * L3) & (col < (row + 1) * L3)
    pool = jnp.where(sel, 1.0 / L3, 0.0)
    out_ref[...] = jnp.dot(pool, y3, preferred_element_type=jnp.float32)


def prepare_weights(params, kernels):
    """One-time weight prep (transpose / pad / pack) - hoisted off the hot path."""
    (w1, _b1, g1, bt1), (w2, _b2, g2, bt2), (w3, _b3, g3, bt3) = params
    K1, K2, K3 = kernels
    cout1, cin1, _ = w1.shape

    # Layer-1 weight in host-im2col order: row (k*cin + c) -> col cout.
    w1t = jnp.transpose(w1, (2, 1, 0)).reshape(K1 * cin1, cout1)
    w1p = jnp.pad(w1t, ((0, CPAD - K1 * cin1), (0, CPAD - cout1)))   # (128,128)

    def prep_w(w):                                      # per-tap (CPAD,CPAD) blocks
        cout, cin, K = w.shape
        wt = jnp.transpose(w, (2, 1, 0))                # (K, cin, cout)
        wt = jnp.pad(wt, ((0, 0), (0, CPAD - cin), (0, CPAD - cout)))
        return wt.reshape(K * CPAD, CPAD)

    def pad_vec(v):
        return jnp.pad(v, (0, CPAD - v.shape[0]))

    gbt = jnp.stack([pad_vec(g1), pad_vec(bt1),
                     pad_vec(g2), pad_vec(bt2),
                     pad_vec(g3), pad_vec(bt3)], axis=0)              # (6, CPAD)
    wpk = jnp.concatenate([prep_w(w2), prep_w(w3), gbt], axis=0)      # (646, CPAD)
    return w1p, wpk, int(w3.shape[0])


@functools.partial(jax.jit, static_argnames=("kernels", "out_channels"))
def block_fcn_forward(x, w1p, wpk, *, kernels, out_channels):
    """x: (N, Cin, T) float32 (PyTorch NCL). Returns (N, Cout, 1)."""
    K1, K2, K3 = kernels
    N, cin, T = x.shape
    L1 = T - K1 + 1
    L2 = L1 - K2 + 1
    L3 = L2 - K3 + 1

    # Host-side layer-1 im2col (layout glue only, data is tiny):
    #   xs1[n, l, k*cin + c] = x[n, c, l + k]
    taps = jnp.stack([x[:, :, k:k + L1] for k in range(K1)], axis=-1)  # (N,cin,L1,K1)
    xs1 = jnp.transpose(taps, (0, 2, 3, 1)).reshape(N, L1, K1 * cin)
    xs1 = jnp.pad(xs1, ((0, 0), (0, 0), (0, CPAD - K1 * cin)))
    xs1 = xs1.reshape(N * L1, CPAD).astype(jnp.float32)

    kernel = functools.partial(blockfcn_kernel, dims=(N, L1, L2, L3, K2, K3))
    vmem = pl.BlockSpec(memory_space=pltpu.MemorySpace.VMEM)
    out = pl.pallas_call(
        kernel,
        out_shape=jax.ShapeDtypeStruct((N, CPAD), jnp.float32),
        in_specs=[vmem, vmem, vmem],
        out_specs=vmem,
    )(xs1, w1p, wpk)
    return out[:, :out_channels, None]                  # (N, Cout, 1) AvgPool1d layout


def block_fcn_reference(x, params, kernels):
    """Pure-JAX reference with the full PyTorch math (incl. conv bias)."""
    h = x.astype(jnp.float32)                           # (N, C, L)
    for (w, b, g, bt), K in zip(params, kernels):
        N, Cin, Lin = h.shape
        Lout = Lin - K + 1
        y = jnp.zeros((N, w.shape[0], Lout), jnp.float32)
        for k in range(K):
            y = y + jnp.einsum('ncl,oc->nol', h[:, :, k:k + Lout], w[:, :, k])
        y = y + b[None, :, None]
        mean = jnp.mean(y, axis=(0, 2), keepdims=True)
        var = jnp.mean((y - mean) ** 2, axis=(0, 2), keepdims=True)
        y = (y - mean) / jnp.sqrt(var + EPS)
        y = y * g[None, :, None] + bt[None, :, None]
        h = jnp.maximum(y, 0.0)
    return jnp.mean(h, axis=2, keepdims=True)


if __name__ == "__main__":
    # BlockFCN defaults: channels=[1, 64, 128, 64], kernels=[5, 3, 2]
    channels = [1, 64, 128, 64]
    kernels = (5, 3, 2)
    N, T = 2, 16   # time_steps=16 -> L1=12, L2=10, L3=9 (= AvgPool kernel_size)

    key = jax.random.PRNGKey(0)
    keys = jax.random.split(key, 13)
    params = []
    ki = 0
    for li in range(3):
        cin, cout, K = channels[li], channels[li + 1], kernels[li]
        bound = 1.0 / (cin * K) ** 0.5
        w = jax.random.uniform(keys[ki], (cout, cin, K), jnp.float32, -bound, bound); ki += 1
        b = jax.random.uniform(keys[ki], (cout,), jnp.float32, -bound, bound); ki += 1
        g = 1.0 + 0.1 * jax.random.normal(keys[ki], (cout,), jnp.float32); ki += 1
        bt = 0.1 * jax.random.normal(keys[ki], (cout,), jnp.float32); ki += 1
        params.append((w, b, g, bt))

    x = jax.random.normal(keys[ki], (N, channels[0], T), jnp.float32)

    # One-time weight prep (hoisted out of the per-call path).
    w1p, wpk, cout3 = prepare_weights(params, kernels)
    w1p, wpk = jax.block_until_ready((w1p, wpk))

    out = jax.block_until_ready(
        block_fcn_forward(x, w1p, wpk, kernels=kernels, out_channels=cout3))
    assert out.shape == (N, channels[-1], 1), out.shape

    ref = jax.block_until_ready(block_fcn_reference(x, params, kernels))
    assert jnp.allclose(out, ref, atol=1e-4, rtol=1e-4), float(jnp.max(jnp.abs(out - ref)))

    print("KERNEL_OK")
</pallas_src>

<mosaic_0001>
module attributes {stable_mosaic.version = 11 : i64} {
  func.func @blockfcn_kernel(%arg0: memref<24x128xf32, #tpu.memory_space<vmem>>, %arg1: memref<128x128xf32, #tpu.memory_space<vmem>>, %arg2: memref<646x128xf32, #tpu.memory_space<vmem>>, %arg3: memref<2x128xf32, #tpu.memory_space<vmem>>) attributes {dimension_semantics = [], scalar_prefetch = 0 : i64, scratch_operands = 0 : i64, tpu.core_type = #tpu.core_type<tc>} {
    %c640 = arith.constant 640 : index
    %c0 = arith.constant 0 : index
    %0 = vector.load %arg2[%c640, %c0] : memref<646x128xf32, #tpu.memory_space<vmem>>, vector<6x128xf32>
    %c0_0 = arith.constant 0 : index
    %c0_1 = arith.constant 0 : index
    %1 = vector.load %arg0[%c0_0, %c0_1] : memref<24x128xf32, #tpu.memory_space<vmem>>, vector<24x128xf32>
    %c0_2 = arith.constant 0 : index
    %c0_3 = arith.constant 0 : index
    %2 = vector.load %arg1[%c0_2, %c0_3] : memref<128x128xf32, #tpu.memory_space<vmem>>, vector<128x128xf32>
    %cst = arith.constant dense<0.000000e+00> : vector<24x128xf32>
    %3 = tpu.matmul %1, %2, %cst {dimension_numbers = #tpu.dot_dimension_numbers<[1], [0], [0], [1], [0, 0, 1, 1], [], []>} : vector<24x128xf32>, vector<128x128xf32>, vector<24x128xf32> -> vector<24x128xf32>
    %4 = vector.extract_strided_slice %0 {offsets = [0, 0], sizes = [1, 128], strides = [1, 1]} : vector<6x128xf32> to vector<1x128xf32>
    %5 = vector.extract_strided_slice %0 {offsets = [1, 0], sizes = [1, 128], strides = [1, 1]} : vector<6x128xf32> to vector<1x128xf32>
    %cst_4 = arith.constant dense<0.000000e+00> : vector<128xf32>
    %6 = vector.multi_reduction <add>, %3, %cst_4 [0] : vector<24x128xf32> to vector<128xf32>
    %7 = vector.shape_cast %6 : vector<128xf32> to vector<1x128xf32>
    %cst_5 = arith.constant 0.0416666679 : f32
    %8 = vector.broadcast %cst_5 : f32 to vector<1x128xf32>
    %9 = arith.mulf %7, %8 : vector<1x128xf32>
    %10 = arith.mulf %3, %3 : vector<24x128xf32>
    %cst_6 = arith.constant dense<0.000000e+00> : vector<128xf32>
    %11 = vector.multi_reduction <add>, %10, %cst_6 [0] : vector<24x128xf32> to vector<128xf32>
    %12 = vector.shape_cast %11 : vector<128xf32> to vector<1x128xf32>
    %cst_7 = arith.constant 0.0416666679 : f32
    %13 = vector.broadcast %cst_7 : f32 to vector<1x128xf32>
    %14 = arith.mulf %12, %13 : vector<1x128xf32>
    %15 = arith.mulf %9, %9 : vector<1x128xf32>
    %16 = arith.subf %14, %15 : vector<1x128xf32>
    %cst_8 = arith.constant 1.000000e-03 : f32
    %17 = vector.broadcast %cst_8 : f32 to vector<1x128xf32>
    %18 = arith.addf %16, %17 : vector<1x128xf32>
    %19 = math.rsqrt %18 : vector<1x128xf32>
    %20 = arith.mulf %4, %19 : vector<1x128xf32>
    %21 = vector.broadcast %20 : vector<1x128xf32> to vector<24x128xf32>
    %22 = arith.mulf %3, %21 : vector<24x128xf32>
    %23 = arith.mulf %9, %20 : vector<1x128xf32>
    %24 = arith.subf %5, %23 : vector<1x128xf32>
    %25 = vector.broadcast %24 : vector<1x128xf32> to vector<24x128xf32>
    %26 = arith.addf %22, %25 : vector<24x128xf32>
    %cst_9 = arith.constant 0.000000e+00 : f32
    %27 = vector.broadcast %cst_9 : f32 to vector<24x128xf32>
    %28 = arith.maximumf %26, %27 : vector<24x128xf32>
    %29 = vector.shape_cast %28 : vector<24x128xf32> to vector<2x12x128xf32>
    %30 = vector.extract_strided_slice %29 {offsets = [0, 0, 0], sizes = [2, 10, 128], strides = [1, 1, 1]} : vector<2x12x128xf32> to vector<2x10x128xf32>
    %31 = vector.shape_cast %30 : vector<2x10x128xf32> to vector<20x128xf32>
    %c0_10 = arith.constant 0 : index
    %c0_11 = arith.constant 0 : index
    %32 = vector.load %arg2[%c0_10, %c0_11] : memref<646x128xf32, #tpu.memory_space<vmem>>, vector<128x128xf32>
    %cst_12 = arith.constant dense<0.000000e+00> : vector<20x128xf32>
    %33 = tpu.matmul %31, %32, %cst_12 {dimension_numbers = #tpu.dot_dimension_numbers<[1], [0], [0], [1], [0, 0, 1, 1], [], []>} : vector<20x128xf32>, vector<128x128xf32>, vector<20x128xf32> -> vector<20x128xf32>
    %34 = vector.extract_strided_slice %29 {offsets = [0, 1, 0], sizes = [2, 10, 128], strides = [1, 1, 1]} : vector<2x12x128xf32> to vector<2x10x128xf32>
    %35 = vector.shape_cast %34 : vector<2x10x128xf32> to vector<20x128xf32>
    %c128 = arith.constant 128 : index
    %c0_13 = arith.constant 0 : index
    %36 = vector.load %arg2[%c128, %c0_13] : memref<646x128xf32, #tpu.memory_space<vmem>>, vector<128x128xf32>
    %cst_14 = arith.constant dense<0.000000e+00> : vector<20x128xf32>
    %37 = tpu.matmul %35, %36, %cst_14 {dimension_numbers = #tpu.dot_dimension_numbers<[1], [0], [0], [1], [0, 0, 1, 1], [], []>} : vector<20x128xf32>, vector<128x128xf32>, vector<20x128xf32> -> vector<20x128xf32>
    %38 = arith.addf %33, %37 : vector<20x128xf32>
    %39 = vector.extract_strided_slice %29 {offsets = [0, 2, 0], sizes = [2, 10, 128], strides = [1, 1, 1]} : vector<2x12x128xf32> to vector<2x10x128xf32>
    %40 = vector.shape_cast %39 : vector<2x10x128xf32> to vector<20x128xf32>
    %c256 = arith.constant 256 : index
    %c0_15 = arith.constant 0 : index
    %41 = vector.load %arg2[%c256, %c0_15] : memref<646x128xf32, #tpu.memory_space<vmem>>, vector<128x128xf32>
    %cst_16 = arith.constant dense<0.000000e+00> : vector<20x128xf32>
    %42 = tpu.matmul %40, %41, %cst_16 {dimension_numbers = #tpu.dot_dimension_numbers<[1], [0], [0], [1], [0, 0, 1, 1], [], []>} : vector<20x128xf32>, vector<128x128xf32>, vector<20x128xf32> -> vector<20x128xf32>
    %43 = arith.addf %38, %42 : vector<20x128xf32>
    %44 = vector.extract_strided_slice %0 {offsets = [2, 0], sizes = [1, 128], strides = [1, 1]} : vector<6x128xf32> to vector<1x128xf32>
    %45 = vector.extract_strided_slice %0 {offsets = [3, 0], sizes = [1, 128], strides = [1, 1]} : vector<6x128xf32> to vector<1x128xf32>
    %cst_17 = arith.constant dense<0.000000e+00> : vector<128xf32>
    %46 = vector.multi_reduction <add>, %43, %cst_17 [0] : vector<20x128xf32> to vector<128xf32>
    %47 = vector.shape_cast %46 : vector<128xf32> to vector<1x128xf32>
    %cst_18 = arith.constant 5.000000e-02 : f32
    %48 = vector.broadcast %cst_18 : f32 to vector<1x128xf32>
    %49 = arith.mulf %47, %48 : vector<1x128xf32>
    %50 = arith.mulf %43, %43 : vector<20x128xf32>
    %cst_19 = arith.constant dense<0.000000e+00> : vector<128xf32>
    %51 = vector.multi_reduction <add>, %50, %cst_19 [0] : vector<20x128xf32> to vector<128xf32>
    %52 = vector.shape_cast %51 : vector<128xf32> to vector<1x128xf32>
    %cst_20 = arith.constant 5.000000e-02 : f32
    %53 = vector.broadcast %cst_20 : f32 to vector<1x128xf32>
    %54 = arith.mulf %52, %53 : vector<1x128xf32>
    %55 = arith.mulf %49, %49 : vector<1x128xf32>
    %56 = arith.subf %54, %55 : vector<1x128xf32>
    %cst_21 = arith.constant 1.000000e-03 : f32
    %57 = vector.broadcast %cst_21 : f32 to vector<1x128xf32>
    %58 = arith.addf %56, %57 : vector<1x128xf32>
    %59 = math.rsqrt %58 : vector<1x128xf32>
    %60 = arith.mulf %44, %59 : vector<1x128xf32>
    %61 = vector.broadcast %60 : vector<1x128xf32> to vector<20x128xf32>
    %62 = arith.mulf %43, %61 : vector<20x128xf32>
    %63 = arith.mulf %49, %60 : vector<1x128xf32>
    %64 = arith.subf %45, %63 : vector<1x128xf32>
    %65 = vector.broadcast %64 : vector<1x128xf32> to vector<20x128xf32>
    %66 = arith.addf %62, %65 : vector<20x128xf32>
    %cst_22 = arith.constant 0.000000e+00 : f32
    %67 = vector.broadcast %cst_22 : f32 to vector<20x128xf32>
    %68 = arith.maximumf %66, %67 : vector<20x128xf32>
    %69 = vector.shape_cast %68 : vector<20x128xf32> to vector<2x10x128xf32>
    %70 = vector.extract_strided_slice %69 {offsets = [0, 0, 0], sizes = [2, 9, 128], strides = [1, 1, 1]} : vector<2x10x128xf32> to vector<2x9x128xf32>
    %71 = vector.shape_cast %70 : vector<2x9x128xf32> to vector<18x128xf32>
    %c384 = arith.constant 384 : index
    %c0_23 = arith.constant 0 : index
    %72 = vector.load %arg2[%c384, %c0_23] : memref<646x128xf32, #tpu.memory_space<vmem>>, vector<128x128xf32>
    %cst_24 = arith.constant dense<0.000000e+00> : vector<18x128xf32>
    %73 = tpu.matmul %71, %72, %cst_24 {dimension_numbers = #tpu.dot_dimension_numbers<[1], [0], [0], [1], [0, 0, 1, 1], [], []>} : vector<18x128xf32>, vector<128x128xf32>, vector<18x128xf32> -> vector<18x128xf32>
    %74 = vector.extract_strided_slice %69 {offsets = [0, 1, 0], sizes = [2, 9, 128], strides = [1, 1, 1]} : vector<2x10x128xf32> to vector<2x9x128xf32>
    %75 = vector.shape_cast %74 : vector<2x9x128xf32> to vector<18x128xf32>
    %c512 = arith.constant 512 : index
    %c0_25 = arith.constant 0 : index
    %76 = vector.load %arg2[%c512, %c0_25] : memref<646x128xf32, #tpu.memory_space<vmem>>, vector<128x128xf32>
    %cst_26 = arith.constant dense<0.000000e+00> : vector<18x128xf32>
    %77 = tpu.matmul %75, %76, %cst_26 {dimension_numbers = #tpu.dot_dimension_numbers<[1], [0], [0], [1], [0, 0, 1, 1], [], []>} : vector<18x128xf32>, vector<128x128xf32>, vector<18x128xf32> -> vector<18x128xf32>
    %78 = arith.addf %73, %77 : vector<18x128xf32>
    %79 = vector.extract_strided_slice %0 {offsets = [4, 0], sizes = [1, 128], strides = [1, 1]} : vector<6x128xf32> to vector<1x128xf32>
    %80 = vector.extract_strided_slice %0 {offsets = [5, 0], sizes = [1, 128], strides = [1, 1]} : vector<6x128xf32> to vector<1x128xf32>
    %cst_27 = arith.constant dense<0.000000e+00> : vector<128xf32>
    %81 = vector.multi_reduction <add>, %78, %cst_27 [0] : vector<18x128xf32> to vector<128xf32>
    %82 = vector.shape_cast %81 : vector<128xf32> to vector<1x128xf32>
    %cst_28 = arith.constant 0.055555556 : f32
    %83 = vector.broadcast %cst_28 : f32 to vector<1x128xf32>
    %84 = arith.mulf %82, %83 : vector<1x128xf32>
    %85 = arith.mulf %78, %78 : vector<18x128xf32>
    %cst_29 = arith.constant dense<0.000000e+00> : vector<128xf32>
    %86 = vector.multi_reduction <add>, %85, %cst_29 [0] : vector<18x128xf32> to vector<128xf32>
    %87 = vector.shape_cast %86 : vector<128xf32> to vector<1x128xf32>
    %cst_30 = arith.constant 0.055555556 : f32
    %88 = vector.broadcast %cst_30 : f32 to vector<1x128xf32>
    %89 = arith.mulf %87, %88 : vector<1x128xf32>
    %90 = arith.mulf %84, %84 : vector<1x128xf32>
    %91 = arith.subf %89, %90 : vector<1x128xf32>
    %cst_31 = arith.constant 1.000000e-03 : f32
    %92 = vector.broadcast %cst_31 : f32 to vector<1x128xf32>
    %93 = arith.addf %91, %92 : vector<1x128xf32>
    %94 = math.rsqrt %93 : vector<1x128xf32>
    %95 = arith.mulf %79, %94 : vector<1x128xf32>
    %96 = vector.broadcast %95 : vector<1x128xf32> to vector<18x128xf32>
    %97 = arith.mulf %78, %96 : vector<18x128xf32>
    %98 = arith.mulf %84, %95 : vector<1x128xf32>
    %99 = arith.subf %80, %98 : vector<1x128xf32>
    %100 = vector.broadcast %99 : vector<1x128xf32> to vector<18x128xf32>
    %101 = arith.addf %97, %100 : vector<18x128xf32>
    %cst_32 = arith.constant 0.000000e+00 : f32
    %102 = vector.broadcast %cst_32 : f32 to vector<18x128xf32>
    %103 = arith.maximumf %101, %102 : vector<18x128xf32>
    %104 = tpu.iota {dimensions = array<i32: 0>} : vector<2x18xi32>
    %105 = tpu.iota {dimensions = array<i32: 1>} : vector<2x18xi32>
    %c9_i32 = arith.constant 9 : i32
    %106 = vector.broadcast %c9_i32 : i32 to vector<2x18xi32>
    %107 = arith.muli %104, %106 : vector<2x18xi32>
    %108 = arith.cmpi sge, %105, %107 : vector<2x18xi32>
    %c1_i32 = arith.constant 1 : i32
    %109 = vector.broadcast %c1_i32 : i32 to vector<2x18xi32>
    %110 = arith.addi %104, %109 : vector<2x18xi32>
    %c9_i32_33 = arith.constant 9 : i32
    %111 = vector.broadcast %c9_i32_33 : i32 to vector<2x18xi32>
    %112 = arith.muli %110, %111 : vector<2x18xi32>
    %113 = arith.cmpi slt, %105, %112 : vector<2x18xi32>
    %114 = arith.andi %108, %113 : vector<2x18xi1>
    %cst_34 = arith.constant 0.111111112 : f32
    %cst_35 = arith.constant 0.000000e+00 : f32
    %115 = vector.broadcast %cst_34 : f32 to vector<2x18xf32>
    %116 = vector.broadcast %cst_35 : f32 to vector<2x18xf32>
    %117 = arith.select %114, %115, %116 : vector<2x18xi1>, vector<2x18xf32>
    %cst_36 = arith.constant dense<0.000000e+00> : vector<2x128xf32>
    %118 = tpu.matmul %117, %103, %cst_36 {dimension_numbers = #tpu.dot_dimension_numbers<[1], [0], [0], [1], [0, 0, 1, 1], [], []>} : vector<2x18xf32>, vector<18x128xf32>, vector<2x128xf32> -> vector<2x128xf32>
    %c0_37 = arith.constant 0 : index
    %c0_38 = arith.constant 0 : index
    %119 = vector.load %arg3[%c0_37, %c0_38] : memref<2x128xf32, #tpu.memory_space<vmem>>, vector<2x128xf32>
    tpu.vector_store %arg3[%c0_37, %c0_38], %118 {strides = array<i32>} : memref<2x128xf32, #tpu.memory_space<vmem>>, vector<2x128xf32>,
    return
  }
}

</mosaic_0001>

<bundles_post_ra>
// kernel: block_fcn_forward.1
= control target key start
LH: loop header
LB: loop body
LE: loop exit
PB: predicated region body
PF: predicated region fallthrough
CT: control target
= control target key end

     0   :  { %8 = vsyncpa [#allocation3], 0  ;;  %s2520_s0 = inlined_call_operand.vmem [shape: f32[24,128], index: 0, kind: input, shape index: {}]   ;;  %s2521_s1 = inlined_call_operand.vmem [shape: f32[128,128], index: 1, kind: input, shape index: {}]   ;;  %s2522_s2 = inlined_call_operand.hbm [shape: f32[646,128], index: 2, kind: input, shape index: {}]   ;;  %s2523_s3 = inlined_call_operand.hbm [shape: f32[2,128], index: 3, kind: output, shape index: {}]  }
   0x1   :  { %9 = vsyncpa [#allocation4], 0  ;;  %s2058_s12 = smov [#allocation2]   ;;  %s2010_s16 = scalar_lea.hbm %s2522_s2, 10368 }
   0x2   :  { %s19_s13 = sshll.u32 %s2058_s12, 4  ;;  %p2011_p0 = scmp.ne.s32.totalorder %s2522_s2, %s2010_s16  ;;  %s20_s13 = int_to_ptr.vmem [resolvable:$true] %s19_s13 }
   0x3   :  { %p2014_p1 = scmp.lt.u32.totalorder %s2010_s16, %s2522_s2 }
   0x5   :  { %p2016_p2 = pnand %p2014_p1, %p2011_p0 }
   0x7   :  { %2019 = shalt.err (!%p2016_p2)
}
   0x8   :  { %s2020_s21 = scalar_lea.vmem %s20_s13, 10368  ;;  %p2025_p4 = scmp.lt.s32.totalorder %s20_s13, %s20_s13 }
   0x9   :  { %p2021_p3 = scmp.ne.s32.totalorder %s20_s13, %s2020_s21  ;;  %p2026_p5 = scmp.lt.s32.totalorder %s2020_s21, %s2020_s21 }
   0xb   :  { %p2027_p6 = por %p2026_p5, %p2025_p4 }
   0xd   :  { %p2028_p7 = pnand %p2027_p6, %p2021_p3 }
   0xf   :  { %2031 = shalt.err (!%p2028_p7)
}
  0x10   :  { %s2059_s22 = smov 128   ;;  %s2060_s23 = smov 8  }
  0x11   :  { %25 = dma.hbm_to_vmem [thread:$0]  %s2522_s2, 10368, %s20_s13, [#allocation3], %s2059_s22, %s2059_s22, %s2060_s23  }
  0x12   :  { %2054 = dma.done.wait [#allocation3], 10368  }
  0x13   :  { %2055 = vsyncadd [#allocation3], 4294956928  ;;  %v2061_v0 = vmov 0.0|0.0   ;;  %vm2062_vm0 = vmmov 0   ;;  %v2063_v1 = vmov 0.0   ;;  %v33_v2 = vld [vmem:[%s2521_s1] sm:$0xff] }
  0x14   :  { %1830 = vmatprep.subr.bf16.mxu0 %v2061_v0  ;;  %1607 = vmatprep.mubr.msk.f32.mxu0 %vm2062_vm0, %v2063_v1  ;;  %v34_v3 = vld [vmem:[%s2521_s1 + $0x8] sm:$0xff]  ;;  %v35_v4 = vld [vmem:[%s2521_s1 + $0x10] sm:$0xff]  ;;  %v36_v6 = vld [vmem:[%s2521_s1 + $0x18] sm:$0xff]  ;;  %vm247_vm1 = vcmask 1040384   ;;  %vm248_vm2 = vcmask 1042434   ;;  %vm250_vm4 = vcmask 1044484  }
  0x15   :  { %1854 = vmatprep.subr.bf16.mxu1 %v2061_v0  ;;  %1648 = vmatprep.mubr.msk.f32.mxu1 %vm2062_vm0, %v2063_v1  ;;  %v1831_v5 = vpack.c.bf16 %v34_v3, %v33_v2  ;;  %v1834_v7 = vpack.c.bf16 %v36_v6, %v35_v4  ;;  %v37_v8 = vld [vmem:[%s2521_s1 + $0x20] sm:$0xff]  ;;  %v38_v9 = vld [vmem:[%s2521_s1 + $0x28] sm:$0xff]  ;;  %v39_v11 = vld [vmem:[%s2521_s1 + $0x30] sm:$0xff]  ;;  %vm252_vm6 = vcmask 1046534   ;;  %vm697_vm8 = vcmask 1043456  }
  0x16   :  { %v1837_v10 = vpack.c.bf16 %v38_v9, %v37_v8  ;;  %v40_v12 = vld [vmem:[%s2521_s1 + $0x38] sm:$0xff]  ;;  %v41_v14 = vld [vmem:[%s2521_s1 + $0x40] sm:$0xff]  ;;  %v42_v15 = vld [vmem:[%s2521_s1 + $0x48] sm:$0xff]  ;;  %vm1297_vm9 = vcmask 1041408   ;;  %vm1358_vm13 = vcmask 146432  }
  0x17   :  { %1832 = vmatpush3.bf16.msra.mxu0 %v1831_v5  ;;  %v1840_v13 = vpack.c.bf16 %v40_v12, %v39_v11  ;;  %v1843_v16 = vpack.c.bf16 %v42_v15, %v41_v14  ;;  %v43_v17 = vld [vmem:[%s2521_s1 + $0x50] sm:$0xff]  ;;  %v44_v18 = vld [vmem:[%s2521_s1 + $0x58] sm:$0xff]  ;;  %v45_v20 = vld [vmem:[%s2521_s1 + $0x60] sm:$0xff] }
  0x18   :  { %1833 = vmatprep.subr.bf16.mxu0 %v2061_v0  ;;  %v1846_v19 = vpack.c.bf16 %v44_v18, %v43_v17  ;;  %v46_v21 = vld [vmem:[%s2521_s1 + $0x68] sm:$0xff]  ;;  %v47_v23 = vld [vmem:[%s2521_s1 + $0x70] sm:$0xff]  ;;  %v48_v24 = vld [vmem:[%s2521_s1 + $0x78] sm:$0xff] }
  0x19   :  { %v1849_v22 = vpack.c.bf16 %v46_v21, %v45_v20  ;;  %v1852_v25 = vpack.c.bf16 %v48_v24, %v47_v23  ;;  %v30_v26 = vld [vmem:[%s2520_s0] sm:$0xff]  ;;  %v31_v27 = vld [vmem:[%s2520_s0 + $0x8] sm:$0xff]  ;;  %v32_v28 = vld [vmem:[%s2520_s0 + $0x10] sm:$0xff]  ;;  %v155_v21 = vlaneseq  ;;  %s2066_s0 = smov [#allocation5]  }
  0x1a   :  { %v286_v29 = vld [vmem:[#allocation2 + $0x80] sm:$0xff]  ;;  %v287_v30 = vld [vmem:[#allocation2 + $0x88] sm:$0xff]  ;;  %v288_v32 = vld [vmem:[#allocation2 + $0x90] sm:$0xff]  ;;  %s1442_s7 = sshll.u32 %s2066_s0, 4  ;;  %s1443_s7 = int_to_ptr.vmem [resolvable:$true] %s1442_s7 }
  0x1b   :  { %1835 = vmatpush3.bf16.msra.mxu0 %v1834_v7  ;;  %v1855_v31 = vpack.c.bf16 %v287_v30, %v286_v29  ;;  %v289_v33 = vld [vmem:[#allocation2 + $0x98] sm:$0xff]  ;;  %v290_v35 = vld [vmem:[#allocation2 + $0xa0] sm:$0xff]  ;;  %v291_v36 = vld [vmem:[#allocation2 + $0xa8] sm:$0xff]  ;;  %s2032_s8 = scalar_lea.vmem %s1443_s7, 32  ;;  %p2037_p9 = scmp.lt.s32.totalorder %s1443_s7, %s1443_s7 }
  0x1c   :  { %1836 = vmatprep.subr.bf16.mxu0 %v2061_v0  ;;  %v1858_v34 = vpack.c.bf16 %v289_v33, %v288_v32  ;;  %v1861_v37 = vpack.c.bf16 %v291_v36, %v290_v35  ;;  %v292_v38 = vld [vmem:[#allocation2 + $0xb0] sm:$0xff]  ;;  %v293_v39 = vld [vmem:[#allocation2 + $0xb8] sm:$0xff]  ;;  %v294_v41 = vld [vmem:[#allocation2 + $0xc0] sm:$0xff]  ;;  %p2033_p8 = scmp.ne.s32.totalorder %s1443_s7, %s2032_s8  ;;  %p2038_p10 = scmp.lt.s32.totalorder %s2032_s8, %s2032_s8 }
  0x1d   :  { %1856 = vmatpush3.bf16.msra.mxu1 %v1855_v31  ;;  %v1864_v40 = vpack.c.bf16 %v293_v39, %v292_v38  ;;  %v295_v42 = vld [vmem:[#allocation2 + $0xc8] sm:$0xff]  ;;  %v296_v44 = vld [vmem:[#allocation2 + $0xd0] sm:$0xff]  ;;  %v297_v45 = vld [vmem:[#allocation2 + $0xd8] sm:$0xff] }
  0x1e   :  { %1857 = vmatprep.subr.bf16.mxu1 %v2061_v0  ;;  %v1867_v43 = vpack.c.bf16 %v295_v42, %v294_v41  ;;  %v298_v46 = vld [vmem:[#allocation2 + $0xe0] sm:$0xff]  ;;  %v1870_v47 = vpack.c.bf16 %v297_v45, %v296_v44  ;;  %v299_v48 = vld [vmem:[#allocation2 + $0xe8] sm:$0xff]  ;;  %v300_v50 = vld [vmem:[#allocation2 + $0xf0] sm:$0xff]  ;;  %p2039_p11 = por %p2038_p10, %p2037_p9 }
  0x1f   :  { %1838 = vmatpush3.bf16.msra.mxu0 %v1837_v10  ;;  %v1873_v49 = vpack.c.bf16 %v299_v48, %v298_v46  ;;  %v301_v51 = vld [vmem:[#allocation2 + $0xf8] sm:$0xff]  ;;  %v2187_v23 = vld [vmem:[#allocation2 + $0x280] sm:$0x3f]  ;;  %vm249_vm3 = vmor %vm247_vm1, %vm248_vm2 }
  0x20   :  { %1839 = vmatprep.subr.bf16.mxu0 %v2061_v0  ;;  %v1876_v52 = vpack.c.bf16 %v301_v51, %v300_v50  ;;  %vm251_vm5 = vmor %vm249_vm3, %vm250_vm4  ;;  %p2040_p12 = pnand %p2039_p11, %p2033_p8 }
  0x21   :  { %1859 = vmatpush3.bf16.msra.mxu1 %v1858_v34  ;;  %vm2233_vm7 = vmor %vm251_vm5, %vm252_vm6 }
  0x22   :  { %1860 = vmatprep.subr.bf16.mxu1 %v2061_v0 }
  0x23   :  { %1841 = vmatpush3.bf16.msra.mxu0 %v1840_v13 }
  0x24   :  { %1842 = vmatprep.subr.bf16.mxu0 %v2061_v0 }
  0x25   :  { %1862 = vmatpush3.bf16.msra.mxu1 %v1861_v37 }
  0x26   :  { %1863 = vmatprep.subr.bf16.mxu1 %v2061_v0 }
  0x27   :  { %1844 = vmatpush3.bf16.msra.mxu0 %v1843_v16 }
  0x28   :  { %1845 = vmatprep.subr.bf16.mxu0 %v2061_v0 }
  0x29   :  { %1865 = vmatpush3.bf16.msra.mxu1 %v1864_v40 }
  0x2a   :  { %1866 = vmatprep.subr.bf16.mxu1 %v2061_v0 }
  0x2b   :  { %1847 = vmatpush3.bf16.msra.mxu0 %v1846_v19 }
  0x2c   :  { %1848 = vmatprep.subr.bf16.mxu0 %v2061_v0 }
  0x2d   :  { %1868 = vmatpush3.bf16.msra.mxu1 %v1867_v43 }
  0x2e   :  { %1869 = vmatprep.subr.bf16.mxu1 %v2061_v0 }
  0x2f   :  { %1850 = vmatpush3.bf16.msra.mxu0 %v1849_v22  ;;  %v2185_v22 = vshrl.u32 %v155_v21, 7 }
  0x30   :  { %1851 = vmatprep.subr.bf16.mxu0 %v2061_v0 }
  0x31   :  { %1871 = vmatpush3.bf16.msra.mxu1 %v1870_v47  ;;  %v157_v24 = vsub.s32 0, %v2185_v22  ;;  %v169_v31 = vsub.s32 1, %v2185_v22 }
  0x32   :  { %1872 = vmatprep.subr.bf16.mxu1 %v2061_v0 }
  0x33   :  { %1853 = vmatpush3.bf16.msra.mxu0 %v1852_v25 }
  0x34   :  { %1926 = vmatprep.subr.bf16.mxu0 %v2061_v0 }
  0x35   :  { %1874 = vmatpush3.bf16.msra.mxu1 %v1873_v49 }
  0x36   :  { %1608 = vmatmul.mubr.f32.vlgmr.msra.gmra.mrb[0].mxu0 %v30_v26  ;;  %1875 = vmatprep.subr.bf16.mxu1 %v2061_v0 }
  0x37   :  { %1610 = vmatprep.mubr.msk.f32.mxu0 %vm2062_vm0, %v2063_v1 }
  0x39   :  { %1877 = vmatpush3.bf16.msra.mxu1 %v1876_v52 }
  0x3a   :  { %1611 = vmatmul.mubr.f32.gmra.mrb[2].mxu0 %v31_v27  ;;  %1878 = vmatprep.subr.bf16.mxu1 %v2061_v0  ;;  %v2064_v27 = vmov 1983009808  }
  0x3b   :  { %1613 = vmatprep.mubr.msk.f32.mxu0 %vm2062_vm0, %v2063_v1 }
  0x3e   :  { %1614 = vmatmul.mubr.f32.gmra.mrb[4].mxu0 %v32_v28  ;;  %v184_v28 = vunpack.c.l.s4 %v2064_v27 }
  0x3f   :  { %1771 = vmatprep.mubr.msk.f32.mxu0 %vm2062_vm0, %v2063_v1 }
  0x40   :  { %v185_v36 = vunpack.c.0.s8 %v184_v28 }
  0x42   :  { %v2194_v39 = vsub.s32 %v185_v36, %v2185_v22 }
 0x109   :  { %v115_v53 = vpop.f32.mrb[0].mxu0 }
 0x10a   :  { %v1609_v54 = vpop.f32.mrb[1].mxu0  ;;  %v138_v56 = vmul.f32 %v115_v53, %v115_v53 }
 0x10d   :  { %v120_v55 = vpop.f32.mrb[2].mxu0 }
 0x10e   :  { %v129_v57 = vadd.f32 %v120_v55, %v115_v53  ;;  %v139_v58 = vmul.f32 %v120_v55, %v120_v55  ;;  %v1612_v59 = vpop.f32.mrb[3].mxu0 }
 0x110   :  { %v141_v60 = vadd.f32 %v139_v58, %v138_v56 }
 0x111   :  { %v125_v61 = vpop.f32.mrb[4].mxu0 }
 0x112   :  { %v130_v62 = vadd.f32 %v129_v57, %v125_v61  ;;  %v140_v63 = vmul.f32 %v125_v61, %v125_v61  ;;  %v1615_v2 = vpop.f32.mrb[5].mxu0 }
 0x114   :  { %v131_v3 = vrot.slane %v130_v62, 4  ;;  %v142_v4 = vadd.f32 %v141_v60, %v140_v63 }
 0x116   :  { %v132_v5 = vadd.f32 %v131_v3, %v130_v62  ;;  %v143_v6 = vrot.slane %v142_v4, 4 }
 0x118   :  { %v133_v7 = vrot.slane %v132_v5, 2  ;;  %v144_v8 = vadd.f32 %v143_v6, %v142_v4 }
 0x11a   :  { %v134_v9 = vadd.f32 %v133_v7, %v132_v5  ;;  %v145_v10 = vrot.slane %v144_v8, 2 }
 0x11c   :  { %v135_v11 = vrot.slane %v134_v9, 1  ;;  %v146_v12 = vadd.f32 %v145_v10, %v144_v8 }
 0x11e   :  { %v136_v13 = vadd.f32 %v135_v11, %v134_v9  ;;  %v147_v14 = vrot.slane %v146_v12, 1 }
 0x120   :  { %v137_v15 = vmul.f32 0.041666668, %v136_v13  ;;  %v148_v16 = vadd.f32 %v147_v14, %v146_v12 }
 0x122   :  { %v149_v17 = vmul.f32 0.041666668, %v148_v16  ;;  %v150_v18 = vmul.f32 %v137_v15, %v137_v15 }
 0x124   :  { %v151_v19 = vsub.f32 %v149_v17, %v150_v18 }
 0x126   :  { %v152_v20 = vadd.f32 0.001, %v151_v19 }
 0x128   :  { %2004 = vrsqrt.f32 %v152_v20 }
 0x132   :  { %v2005_v25 = vpop.eup %2004 }
 0x133   :  { %v154_v26 = vmul.f32 %v2005_v25, %v2187_v23 }
 0x135   :  { %v158_v29 = vrot.slane %v154_v26, %v157_v24  ;;  %v162_v30 = vmul.f32 %v154_v26, %v137_v15 }
 0x137   :  { %v159_v32 = vmul.f32 %v158_v29, %v115_v53  ;;  %v160_v33 = vmul.f32 %v158_v29, %v120_v55  ;;  %v161_v34 = vmul.f32 %v158_v29, %v125_v61  ;;  %v164_v35 = vrot.slane %v162_v30, 7  ;;  %v229_v29 = vld [vmem:[#allocation2] sm:$0xff]  ;;  %v230_v30 = vld [vmem:[#allocation2 + $0x8] sm:$0xff] }
 0x139   :  { %v166_v37 = vsub.f32 %v2187_v23, %v164_v35 }
 0x13b   :  { %v170_v38 = vrot.slane %v166_v37, %v169_v31 }
 0x13d   :  { %v171_v40 = vadd.f32 %v170_v38, %v159_v32  ;;  %v172_v41 = vadd.f32 %v170_v38, %v160_v33  ;;  %v173_v42 = vadd.f32 %v170_v38, %v161_v34 }
 0x13f   :  { %v174_v43 = vmax.f32 %v171_v40, 0.0  ;;  %v175_v44 = vmax.f32 %v172_v41, 0.0  ;;  %v176_v45 = vmax.f32 %v173_v42, 0.0  ;;  %v1879_v41 = vpack.c.bf16 %v230_v30, %v229_v29  ;;  %v242_v29 = vld [vmem:[#allocation2 + $0x68] sm:$0xff] }
 0x141   :  { %v180_v46 = vcombine.high %v174_v43, %v174_v43  ;;  %v181_v47 = vcombine.high %v175_v44, %v175_v44  ;;  %v182_v48 = vcombine.high %v176_v45, %v176_v45  ;;  %v2197_v49 = vrot.slane %v174_v43, %v2194_v39 }
 0x142   :  { %v2200_v50 = vrot.slane %v175_v44, %v2194_v39  ;;  %v2203_v51 = vrot.slane %v176_v45, %v2194_v39  ;;  %v231_v44 = vld [vmem:[#allocation2 + $0x10] sm:$0xff]  ;;  %v232_v45 = vld [vmem:[#allocation2 + $0x18] sm:$0xff] }
 0x143   :  { %v2206_v52 = vrot.slane %v180_v46, %v2194_v39  ;;  %v2209_v53 = vrot.slane %v181_v47, %v2194_v39  ;;  %v2213_v54 = vcombine.high %v2197_v49, %v2197_v49  ;;  %v2220_v56 = vrot.slane %v182_v48, %v2194_v39 }
 0x144   :  { %v2217_v55 = vcombine.high %v2203_v51, %v2203_v51  ;;  %v265_v57 = vrot.slane %v2200_v50, 7  ;;  %v245_v58 = vcombine.high %v2200_v50, %v2200_v50  ;;  %v275_v4 = vrot.slane %v2203_v51, 7 }
 0x145   :  { %v2227_v59 = vcombine.high %v2206_v52, %v2206_v52  ;;  %v256_v60 = vrot.slane %v2213_v54, 7  ;;  %v259_v61 = vrot.slane %v2206_v52, 7  ;;  %v213_v62 = vcombine.high %v2209_v53, %v2209_v53 }
 0x146   :  { %v267_v2 = vrot.slane %v265_v57, 2  ;;  %v268_v3 = vrot.slane %v245_v58, 7  ;;  %v1451_v5 = vrot.slane %v2197_v49, 9  ;;  %v1452_v9 = vrot.slane %v2209_v53, 9 }
 0x147   :  { %v258_v6 = vrot.slane %v256_v60, 2  ;;  %v261_v7 = vrot.slane %v259_v61, 2  ;;  %v262_v8 = vrot.slane %v2227_v59, 7  ;;  %v272_v10 = vrot.slane %v213_v62, 7 }
 0x148   :  { %v277_v11 = vrot.slane %v275_v4, 2  ;;  %v278_v12 = vrot.slane %v2217_v55, 7  ;;  %v257_v13 = vsel %vm2233_vm7, %v1451_v5, %v256_v60  ;;  %v2248_v16 = vcombine.high %v2220_v56, %v2220_v56 }
 0x149   :  { %v260_v14 = vsel %vm2233_vm7, %v258_v6, %v259_v61  ;;  %v264_v15 = vrot.slane %v262_v8, 2  ;;  %v269_v18 = vsel %vm2233_vm7, %v267_v2, %v268_v3  ;;  %v273_v19 = vsel %vm2233_vm7, %v1452_v9, %v272_v10 }
 0x14a   :  { %v302_v17 = vcombine.low %v257_v13, %v260_v14  ;;  %v274_v20 = vrot.slane %v272_v10, 2  ;;  %v263_v24 = vsel %vm2233_vm7, %v261_v7, %v262_v8  ;;  %v319_v26 = vcombine.low %v269_v18, %v273_v19  ;;  %v233_v7 = vld [vmem:[#allocation2 + $0x20] sm:$0xff]  ;;  %v234_v8 = vld [vmem:[#allocation2 + $0x28] sm:$0xff] }
 0x14b   :  { %v266_v25 = vsel %vm2233_vm7, %v264_v15, %v265_v57  ;;  %v281_v27 = vrot.slane %v2220_v56, 7  ;;  %v279_v32 = vsel %vm2233_vm7, %v277_v11, %v278_v12  ;;  %v280_v33 = vrot.slane %v278_v12, 2  ;;  %v235_v15 = vld [vmem:[#allocation2 + $0x30] sm:$0xff]  ;;  %v237_v19 = vld [vmem:[#allocation2 + $0x40] sm:$0xff] }
 0x14c   :  { %v303_v28 = vcombine.low %v263_v24, %v266_v25  ;;  %v276_v31 = vsel %vm2233_vm7, %v274_v20, %v275_v4  ;;  %v284_v36 = vrot.slane %v2248_v16, 7  ;;  %v310_v37 = vrot.slane %v302_v17, %v2194_v39  ;;  %v236_v17 = vld [vmem:[#allocation2 + $0x38] sm:$0xff]  ;;  %v238_v20 = vld [vmem:[#allocation2 + $0x48] sm:$0xff]  ;;  %v239_v25 = vld [vmem:[#allocation2 + $0x50] sm:$0xff] }
 0x14d   :  { %v320_v34 = vcombine.low %v276_v31, %v279_v32  ;;  %v283_v35 = vrot.slane %v281_v27, 2  ;;  %v444_v40 = vcombine.low %v2200_v50, %v2209_v53  ;;  %v327_v42 = vrot.slane %v319_v26, %v2194_v39  ;;  %v240_v26 = vld [vmem:[#allocation2 + $0x58] sm:$0xff]  ;;  %v243_v31 = vld [vmem:[#allocation2 + $0x70] sm:$0xff] }
 0x14e   :  { %v317_v38 = vrot.slane %v303_v28, %v2194_v39  ;;  %v445_v46 = vcombine.low %v213_v62, %v2203_v51  ;;  %v282_v48 = vsel %vm2233_vm7, %v280_v33, %v281_v27  ;;  %v1882_v2 = vpack.c.bf16 %v232_v45, %v231_v44  ;;  %v241_v28 = vld [vmem:[#allocation2 + $0x60] sm:$0xff]  ;;  %v244_v32 = vld [vmem:[#allocation2 + $0x78] sm:$0xff]  ;;  %v557_v44 = vld [vmem:[#allocation2 + $0x128] sm:$0xff] }
 0x14f   :  { %v334_v43 = vrot.slane %v320_v34, %v2194_v39  ;;  %v285_v58 = vsel %vm2233_vm7, %v283_v35, %v284_v36  ;;  %v2276_v60 = vrot.slane %v444_v40, %v2194_v39  ;;  %v568_v3 = vcombine.low %v2213_v54, %v2206_v52 }
 0x150   :  { %v318_v47 = vcombine.low %v310_v37, %v317_v38  ;;  %v2279_v61 = vrot.slane %v445_v46, %v2194_v39  ;;  %v569_v62 = vcombine.low %v2227_v59, %v2200_v50  ;;  %v1453_v4 = vcombine.high %v2200_v50, %v2209_v53  ;;  %v552_v37 = vld [vmem:[#allocation2 + $0x100] sm:$0xff]  ;;  %v553_v38 = vld [vmem:[#allocation2 + $0x108] sm:$0xff] }
 0x151   :  { %v335_v57 = vcombine.low %v327_v42, %v334_v43  ;;  %v586_v5 = vcombine.low %v2203_v51, %v2217_v55  ;;  %v336_v6 = vcombine.low %v282_v48, %v285_v58  ;;  %v2295_v9 = vrot.slane %v568_v3, %v2194_v39  ;;  %v554_v43 = vld [vmem:[#allocation2 + $0x110] sm:$0xff]  ;;  %v559_v48 = vld [vmem:[#allocation2 + $0x138] sm:$0xff]  ;;  %v561_v58 = vld [vmem:[#allocation2 + $0x148] sm:$0xff] }
 0x152   :  { %1649 = vmatmul.mubr.f32.vlgmr.msra.gmra.mrb[0].mxu1 %v318_v47  ;;  %v460_v63 = vcombine.low %v2276_v60, %v2279_v61  ;;  %v2298_v10 = vrot.slane %v569_v62, %v2194_v39  ;;  %v602_v11 = vcombine.low %v2220_v56, %v2248_v16  ;;  %v2303_v12 = vrot.slane %v1453_v4, %v2194_v39  ;;  %v558_v47 = vld [vmem:[#allocation2 + $0x130] sm:$0xff]  ;;  %v564_v62 = vld [vmem:[#allocation2 + $0x160] sm:$0xff] }
 0x153   :  { %1880 = vmatpush3.bf16.msra.mxu1 %v1879_v41  ;;  %1651 = vmatprep.mubr.msk.f32.mxu1 %vm2062_vm0, %v2063_v1  ;;  %v2306_v50 = vrot.slane %v586_v5, %v2194_v39  ;;  %v1885_v53 = vpack.c.bf16 %v234_v8, %v233_v7  ;;  %v343_v14 = vrot.slane %v336_v6, %v2194_v39  ;;  %v562_v61 = vld [vmem:[#allocation2 + $0x150] sm:$0xff]  ;;  %v567_v6 = vld [vmem:[#allocation2 + $0x178] sm:$0xff]  ;;  %v896_v16 = vld [vmem:[#allocation2 + $0x240] sm:$0xff] }
 0x154   :  { %1881 = vmatprep.subr.bf16.mxu1 %v2061_v0  ;;  %v584_v51 = vcombine.low %v2295_v9, %v2298_v10  ;;  %v1888_v18 = vpack.c.bf16 %v236_v17, %v235_v15  ;;  %v1891_v24 = vpack.c.bf16 %v238_v20, %v237_v19  ;;  %v1894_v27 = vpack.c.bf16 %v240_v26, %v239_v25  ;;  %v566_v5 = vld [vmem:[#allocation2 + $0x170] sm:$0xff]  ;;  %v900_v26 = vld [vmem:[#allocation2 + $0x260] sm:$0xff] }
 0x155   :  { %v601_v13 = vcombine.low %v2303_v12, %v2306_v50  ;;  %v1897_v30 = vpack.c.bf16 %v242_v29, %v241_v28  ;;  %v428_v33 = vcombine.low %v2206_v52, %v2227_v59  ;;  %v427_v34 = vcombine.low %v2197_v49, %v2213_v54  ;;  %v555_v52 = vld [vmem:[#allocation2 + $0x118] sm:$0xff]  ;;  %v556_v59 = vld [vmem:[#allocation2 + $0x120] sm:$0xff]  ;;  %v890_v10 = vld [vmem:[#allocation2 + $0x210] sm:$0xff] }
 0x156   :  { %1652 = vmatmul.mubr.f32.gmra.mrb[2].mxu1 %v335_v57  ;;  %v1900_v35 = vpack.c.bf16 %v244_v32, %v243_v31  ;;  %v1903_v41 = vpack.c.bf16 %v553_v38, %v552_v37  ;;  %v1906_v49 = vpack.c.bf16 %v555_v52, %v554_v43  ;;  %v461_v54 = vcombine.low %v2217_v55, %v2220_v56  ;;  %v560_v57 = vld [vmem:[#allocation2 + $0x140] sm:$0xff]  ;;  %v893_v50 = vld [vmem:[#allocation2 + $0x228] sm:$0xff]  ;;  %v898_v20 = vld [vmem:[#allocation2 + $0x250] sm:$0xff] }
 0x157   :  { %1883 = vmatpush3.bf16.msra.mxu1 %v1882_v2  ;;  %1654 = vmatprep.mubr.msk.f32.mxu1 %vm2062_vm0, %v2063_v1  ;;  %v442_v36 = vrot.slane %v428_v33, %v2194_v39  ;;  %v435_v40 = vrot.slane %v427_v34, %v2194_v39  ;;  %v1909_v45 = vpack.c.bf16 %v557_v44, %v556_v59  ;;  %v563_v2 = vld [vmem:[#allocation2 + $0x158] sm:$0xff]  ;;  %v892_v12 = vld [vmem:[#allocation2 + $0x220] sm:$0xff]  ;;  %v902_v29 = vld [vmem:[#allocation2 + $0x270] sm:$0xff] }
 0x158   :  { %1884 = vmatprep.subr.bf16.mxu1 %v2061_v0  ;;  %v468_v46 = vrot.slane %v461_v54, %v2194_v39  ;;  %v1912_v55 = vpack.c.bf16 %v559_v48, %v558_v47  ;;  %v1915_v60 = vpack.c.bf16 %v561_v58, %v560_v57  ;;  %v1918_v3 = vpack.c.bf16 %v563_v2, %v562_v61 }
 0x159   :  { %v443_v42 = vcombine.low %v435_v40, %v442_v36  ;;  %v1924_v7 = vpack.c.bf16 %v567_v6, %v566_v5  ;;  %v609_v8 = vrot.slane %v602_v11, %v2194_v39  ;;  %v1933_v17 = vpack.c.bf16 %v893_v50, %v892_v12  ;;  %v897_v11 = vld [vmem:[#allocation2 + $0x248] sm:$0xff] }
 0x15a   :  { %1655 = vmatmul.mubr.f32.gmra.mrb[4].mxu1 %v343_v14  ;;  %v889_v14 = vld [vmem:[#allocation2 + $0x208] sm:$0xff]  ;;  %v1939_v19 = vpack.c.bf16 %v897_v11, %v896_v16 }
 0x15b   :  { %1886 = vmatpush3.bf16.msra.mxu1 %v1885_v53  ;;  %1689 = vmatprep.mubr.msk.f32.mxu1 %vm2062_vm0, %v2063_v1  ;;  %v888_v53 = vld [vmem:[#allocation2 + $0x200] sm:$0xff] }
 0x15c   :  { %1887 = vmatprep.subr.bf16.mxu1 %v2061_v0  ;;  %v1927_v9 = vpack.c.bf16 %v889_v14, %v888_v53 }
 0x15e   :  { %1928 = vmatpush3.bf16.msra.mxu0 %v1927_v9 }
 0x15f   :  { %1889 = vmatpush3.bf16.msra.mxu1 %v1888_v18  ;;  %1929 = vmatprep.subr.bf16.mxu0 %v2061_v0  ;;  %v895_v18 = vld [vmem:[#allocation2 + $0x238] sm:$0xff] }
 0x160   :  { %1890 = vmatprep.subr.bf16.mxu1 %v2061_v0 }
 0x163   :  { %1892 = vmatpush3.bf16.msra.mxu1 %v1891_v24  ;;  %v899_v24 = vld [vmem:[#allocation2 + $0x258] sm:$0xff] }
 0x164   :  { %1893 = vmatprep.subr.bf16.mxu1 %v2061_v0  ;;  %v1942_v25 = vpack.c.bf16 %v899_v24, %v898_v20 }
 0x167   :  { %1895 = vmatpush3.bf16.msra.mxu1 %v1894_v27  ;;  %v901_v27 = vld [vmem:[#allocation2 + $0x268] sm:$0xff] }
 0x168   :  { %1896 = vmatprep.subr.bf16.mxu1 %v2061_v0  ;;  %v1945_v28 = vpack.c.bf16 %v901_v27, %v900_v26 }
 0x16b   :  { %1898 = vmatpush3.bf16.msra.mxu1 %v1897_v30  ;;  %v903_v30 = vld [vmem:[#allocation2 + $0x278] sm:$0xff] }
 0x16c   :  { %1899 = vmatprep.subr.bf16.mxu1 %v2061_v0  ;;  %v1948_v31 = vpack.c.bf16 %v903_v30, %v902_v29 }
 0x16f   :  { %1901 = vmatpush3.bf16.msra.mxu1 %v1900_v35 }
 0x170   :  { %1902 = vmatprep.subr.bf16.mxu1 %v2061_v0 }
 0x172   :  { %1690 = vmatmul.mubr.f32.vlgmr.msra.gmra.mrb[0].mxu1 %v443_v42 }
 0x173   :  { %1904 = vmatpush3.bf16.msra.mxu1 %v1903_v41  ;;  %1692 = vmatprep.mubr.msk.f32.mxu1 %vm2062_vm0, %v2063_v1 }
 0x174   :  { %1905 = vmatprep.subr.bf16.mxu1 %v2061_v0 }
 0x176   :  { %1693 = vmatmul.mubr.f32.gmra.mrb[2].mxu1 %v460_v63  ;;  %v565_v63 = vld [vmem:[#allocation2 + $0x168] sm:$0xff] }
 0x177   :  { %1907 = vmatpush3.bf16.msra.mxu1 %v1906_v49  ;;  %1695 = vmatprep.mubr.msk.f32.mxu1 %vm2062_vm0, %v2063_v1  ;;  %v1921_v4 = vpack.c.bf16 %v565_v63, %v564_v62 }
 0x178   :  { %1908 = vmatprep.subr.bf16.mxu1 %v2061_v0 }
 0x17a   :  { %1696 = vmatmul.mubr.f32.gmra.mrb[4].mxu1 %v468_v46 }
 0x17b   :  { %1910 = vmatpush3.bf16.msra.mxu1 %v1909_v45  ;;  %1730 = vmatprep.mubr.msk.f32.mxu1 %vm2062_vm0, %v2063_v1 }
 0x17c   :  { %1911 = vmatprep.subr.bf16.mxu1 %v2061_v0 }
 0x17f   :  { %1913 = vmatpush3.bf16.msra.mxu1 %v1912_v55 }
 0x180   :  { %1914 = vmatprep.subr.bf16.mxu1 %v2061_v0 }
 0x183   :  { %1916 = vmatpush3.bf16.msra.mxu1 %v1915_v60 }
 0x184   :  { %1917 = vmatprep.subr.bf16.mxu1 %v2061_v0 }
 0x187   :  { %1919 = vmatpush3.bf16.msra.mxu1 %v1918_v3 }
 0x188   :  { %1920 = vmatprep.subr.bf16.mxu1 %v2061_v0 }
 0x18b   :  { %1922 = vmatpush3.bf16.msra.mxu1 %v1921_v4 }
 0x18c   :  { %1923 = vmatprep.subr.bf16.mxu1 %v2061_v0 }
 0x18f   :  { %1925 = vmatpush3.bf16.msra.mxu1 %v1924_v7  ;;  %v727_v7 = vsub.s32 2, %v2185_v22 }
 0x192   :  { %1731 = vmatmul.mubr.f32.vlgmr.msra.gmra.mrb[0].mxu1 %v584_v51  ;;  %v891_v51 = vld [vmem:[#allocation2 + $0x218] sm:$0xff] }
 0x193   :  { %1733 = vmatprep.mubr.msk.f32.mxu1 %vm2062_vm0, %v2063_v1  ;;  %v1930_v15 = vpack.c.bf16 %v891_v51, %v890_v10  ;;  %v2065_v10 = vmov 1966171168  }
 0x194   :  { %v793_v51 = vunpack.c.l.s4 %v2065_v10 }
 0x195   :  { %1931 = vmatpush3.bf16.msra.mxu0 %v1930_v15  ;;  %v739_v15 = vsub.s32 3, %v2185_v22 }
 0x196   :  { %1734 = vmatmul.mubr.f32.gmra.mrb[2].mxu1 %v601_v13  ;;  %1932 = vmatprep.subr.bf16.mxu0 %v2061_v0  ;;  %v894_v13 = vld [vmem:[#allocation2 + $0x230] sm:$0xff] }
 0x197   :  { %1736 = vmatprep.mubr.msk.f32.mxu1 %vm2062_vm0, %v2063_v1  ;;  %v1936_v56 = vpack.c.bf16 %v895_v18, %v894_v13 }
 0x199   :  { %1934 = vmatpush3.bf16.msra.mxu0 %v1933_v17 }
 0x19a   :  { %1737 = vmatmul.mubr.f32.gmra.mrb[4].mxu1 %v609_v8  ;;  %1935 = vmatprep.subr.bf16.mxu0 %v2061_v0 }
 0x19d   :  { %1937 = vmatpush3.bf16.msra.mxu0 %v1936_v56  ;;  %v794_v56 = vunpack.c.0.s8 %v793_v51 }
 0x19e   :  { %1938 = vmatprep.subr.bf16.mxu0 %v2061_v0 }
 0x19f   :  { %v2376_v24 = vsub.s32 %v794_v56, %v2185_v22 }
 0x1a1   :  { %1940 = vmatpush3.bf16.msra.mxu0 %v1939_v19 }
 0x1a2   :  { %1941 = vmatprep.subr.bf16.mxu0 %v2061_v0 }
 0x1a5   :  { %1943 = vmatpush3.bf16.msra.mxu0 %v1942_v25 }
 0x1a6   :  { %1944 = vmatprep.subr.bf16.mxu0 %v2061_v0 }
 0x1a9   :  { %1946 = vmatpush3.bf16.msra.mxu0 %v1945_v28 }
 0x1aa   :  { %1947 = vmatprep.subr.bf16.mxu0 %v2061_v0 }
 0x1ad   :  { %1949 = vmatpush3.bf16.msra.mxu0 %v1948_v31 }
 0x1ae   :  { %1950 = vmatprep.subr.bf16.mxu0 %v2061_v0 }
 0x265   :  { %v679_v32 = vpop.f32.mrb[0].mxu1 }
 0x266   :  { %v1732_v33 = vpop.f32.mrb[1].mxu1  ;;  %v707_v35 = vmul.f32 %v679_v32, %v679_v32 }
 0x269   :  { %v684_v34 = vpop.f32.mrb[2].mxu1 }
 0x26a   :  { %v696_v36 = vadd.f32 %v684_v34, %v679_v32  ;;  %v708_v37 = vmul.f32 %v684_v34, %v684_v34  ;;  %v1735_v38 = vpop.f32.mrb[3].mxu1 }
 0x26c   :  { %v710_v40 = vadd.f32 %v708_v37, %v707_v35 }
 0x26d   :  { %v689_v41 = vpop.f32.mrb[4].mxu1 }
 0x26e   :  { %v698_v42 = vsel %vm697_vm8, %v689_v41, 0.0  ;;  %v709_v43 = vmul.f32 %v689_v41, %v689_v41  ;;  %v1738_v52 = vpop.f32.mrb[5].mxu1 }
 0x26f   :  { %v699_v49 = vadd.f32 %v698_v42, %v696_v36 }
 0x270   :  { %v711_v54 = vsel %vm697_vm8, %v709_v43, 0.0 }
 0x271   :  { %v700_v59 = vrot.slane %v699_v49, 4  ;;  %v712_v44 = vadd.f32 %v711_v54, %v710_v40 }
 0x273   :  { %v701_v45 = vadd.f32 %v700_v59, %v699_v49  ;;  %v713_v46 = vrot.slane %v712_v44, 4 }
 0x275   :  { %v702_v47 = vrot.slane %v701_v45, 2  ;;  %v714_v48 = vadd.f32 %v713_v46, %v712_v44 }
 0x277   :  { %v703_v55 = vadd.f32 %v702_v47, %v701_v45  ;;  %v715_v57 = vrot.slane %v714_v48, 2 }
 0x279   :  { %v704_v58 = vrot.slane %v703_v55, 1  ;;  %v716_v60 = vadd.f32 %v715_v57, %v714_v48 }
 0x27b   :  { %v705_v61 = vadd.f32 %v704_v58, %v703_v55  ;;  %v717_v2 = vrot.slane %v716_v60, 1 }
 0x27d   :  { %v706_v3 = vmul.f32 0.05, %v705_v61  ;;  %v718_v62 = vadd.f32 %v717_v2, %v716_v60 }
 0x27f   :  { %v719_v63 = vmul.f32 0.05, %v718_v62  ;;  %v720_v4 = vmul.f32 %v706_v3, %v706_v3 }
 0x281   :  { %v721_v5 = vsub.f32 %v719_v63, %v720_v4 }
 0x283   :  { %v722_v6 = vadd.f32 0.001, %v721_v5 }
 0x285   :  { %2006 = vrsqrt.f32 %v722_v6 }
 0x28f   :  { %v2007_v8 = vpop.eup %2006 }
 0x290   :  { %v724_v53 = vmul.f32 %v2007_v8, %v2187_v23 }
 0x292   :  { %v728_v14 = vrot.slane %v724_v53, %v727_v7  ;;  %v732_v9 = vmul.f32 %v724_v53, %v706_v3 }
 0x294   :  { %v729_v12 = vmul.f32 %v728_v14, %v679_v32  ;;  %v730_v50 = vmul.f32 %v728_v14, %v684_v34  ;;  %v731_v13 = vmul.f32 %v728_v14, %v689_v41  ;;  %v734_v17 = vrot.slane %v732_v9, 7 }
 0x296   :  { %v736_v18 = vsub.f32 %v2187_v23, %v734_v17 }
 0x298   :  { %v740_v16 = vrot.slane %v736_v18, %v739_v15  ;;  %v870_v15 = vld [vmem:[#allocation2 + $0x180] sm:$0xff] }
 0x29a   :  { %v741_v11 = vadd.f32 %v740_v16, %v729_v12  ;;  %v742_v19 = vadd.f32 %v740_v16, %v730_v50  ;;  %v743_v20 = vadd.f32 %v740_v16, %v731_v13  ;;  %v871_v12 = vld [vmem:[#allocation2 + $0x188] sm:$0xff] }
 0x29c   :  { %v744_v25 = vmax.f32 %v741_v11, 0.0  ;;  %v745_v26 = vmax.f32 %v742_v19, 0.0  ;;  %v746_v27 = vmax.f32 %v743_v20, 0.0  ;;  %v1951_v20 = vpack.c.bf16 %v871_v12, %v870_v15 }
 0x29e   :  { %v750_v28 = vcombine.high %v744_v25, %v744_v25  ;;  %v757_v29 = vrot.slane %v744_v25, %v2194_v39  ;;  %v767_v30 = vcombine.high %v745_v26, %v745_v26  ;;  %v774_v31 = vrot.slane %v745_v26, %v2194_v39 }
 0x29f   :  { %v790_v32 = vrot.slane %v746_v27, %v2194_v39 }
 0x2a0   :  { %v764_v33 = vrot.slane %v750_v28, %v2194_v39  ;;  %v765_v34 = vcombine.high %v757_v29, %v757_v29  ;;  %v2383_v35 = vrot.slane %v757_v29, %v2376_v24  ;;  %v830_v36 = vrot.slane %v774_v31, %v2376_v24 }
 0x2a1   :  { %v2387_v37 = vrot.slane %v790_v32, %v2376_v24  ;;  %v781_v38 = vrot.slane %v767_v30, %v2194_v39  ;;  %v782_v40 = vcombine.high %v774_v31, %v774_v31  ;;  %v791_v49 = vcombine.high %v790_v32, %v790_v32  ;;  %v872_v31 = vld [vmem:[#allocation2 + $0x190] sm:$0xff]  ;;  %v873_v32 = vld [vmem:[#allocation2 + $0x198] sm:$0xff] }
 0x2a2   :  { %v766_v41 = vcombine.high %v764_v33, %v764_v33  ;;  %v2392_v42 = vcombine.high %v2383_v35, %v2383_v35  ;;  %v2395_v43 = vrot.slane %v765_v34, %v2376_v24  ;;  %v2398_v52 = vrot.slane %v764_v33, %v2376_v24 }
 0x2a3   :  { %v783_v54 = vcombine.high %v781_v38, %v781_v38  ;;  %v837_v59 = vrot.slane %v782_v40, %v2376_v24  ;;  %v845_v44 = vrot.slane %v781_v38, %v2376_v24  ;;  %v2418_v57 = vcombine.high %v2387_v37, %v2387_v37 }
 0x2a4   :  { %v2403_v39 = vrot.slane %v766_v41, %v2376_v24  ;;  %v2407_v45 = vcombine.high %v2395_v43, %v2395_v43  ;;  %v2411_v46 = vcombine.high %v2398_v52, %v2398_v52  ;;  %v904_v47 = vcombine.low %v2392_v42, %v2395_v43 }
 0x2a5   :  { %v846_v48 = vcombine.high %v845_v44, %v845_v44  ;;  %v853_v55 = vrot.slane %v783_v54, %v2376_v24  ;;  %v1454_v58 = vcombine.high %v830_v36, %v837_v59  ;;  %v956_v63 = vcombine.low %v2387_v37, %v2418_v57 }
 0x2a6   :  { %v2422_v60 = vcombine.high %v2403_v39, %v2403_v39  ;;  %v905_v61 = vcombine.low %v2407_v45, %v2398_v52  ;;  %v906_v2 = vcombine.low %v2411_v46, %v2403_v39  ;;  %v2431_v4 = vrot.slane %v791_v49, %v2376_v24 }
 0x2a7   :  { %v854_v3 = vcombine.high %v853_v55, %v853_v55  ;;  %v954_v62 = vcombine.low %v845_v44, %v846_v48  ;;  %v914_v6 = vrot.slane %v904_v47, %v2376_v24  ;;  %v963_v53 = vrot.slane %v1454_v58, %v2376_v24 }
 0x2a8   :  { %v907_v5 = vcombine.low %v2422_v60, %v830_v36  ;;  %v921_v7 = vrot.slane %v905_v61, %v2376_v24  ;;  %v928_v9 = vrot.slane %v906_v2, %v2376_v24  ;;  %v984_v13 = vrot.slane %v956_v63, %v2376_v24  ;;  %v877_v63 = vld [vmem:[#allocation2 + $0x1b8] sm:$0xff] }
 0x2a9   :  { %v955_v8 = vcombine.low %v853_v55, %v854_v3  ;;  %v970_v14 = vrot.slane %v954_v62, %v2376_v24  ;;  %v887_v56 = vcombine.high %v2431_v4, %v2431_v4  ;;  %v838_v25 = vcombine.high %v837_v59, %v837_v59  ;;  %v876_v62 = vld [vmem:[#allocation2 + $0x1b0] sm:$0xff] }
 0x2aa   :  { %v935_v10 = vrot.slane %v907_v5, %v2376_v24  ;;  %v936_v51 = vcombine.low %v914_v6, %v921_v7  ;;  %v1149_v28 = vcombine.low %v830_v36, %v837_v59  ;;  %v1151_v29 = vcombine.low %v846_v48, %v853_v55  ;;  %v878_v7 = vld [vmem:[#allocation2 + $0x1c0] sm:$0xff] }
 0x2ab   :  { %v977_v50 = vrot.slane %v955_v8, %v2376_v24  ;;  %v985_v17 = vcombine.low %v963_v53, %v970_v14  ;;  %v1002_v33 = vcombine.low %v2431_v4, %v887_v56  ;;  %v1150_v34 = vcombine.low %v838_v25, %v845_v44  ;;  %v875_v44 = vld [vmem:[#allocation2 + $0x1a8] sm:$0xff]  ;;  %v880_v14 = vld [vmem:[#allocation2 + $0x1d0] sm:$0xff] }
 0x2ac   :  { %v937_v18 = vcombine.low %v928_v9, %v935_v10  ;;  %v944_v11 = vrot.slane %v936_v51, %v2376_v24  ;;  %v1152_v38 = vcombine.low %v854_v3, %v2387_v37  ;;  %v1159_v41 = vrot.slane %v1149_v28, %v2376_v24  ;;  %v874_v37 = vld [vmem:[#allocation2 + $0x1a0] sm:$0xff]  ;;  %v879_v8 = vld [vmem:[#allocation2 + $0x1c8] sm:$0xff]  ;;  %v881_v9 = vld [vmem:[#allocation2 + $0x1d8] sm:$0xff] }
 0x2ad   :  { %v986_v16 = vcombine.low %v977_v50, %v984_v13  ;;  %v993_v26 = vrot.slane %v985_v17, %v2376_v24  ;;  %v1166_v49 = vrot.slane %v1150_v34, %v2376_v24  ;;  %v1173_v54 = vrot.slane %v1151_v29, %v2376_v24  ;;  %v882_v50 = vld [vmem:[#allocation2 + $0x1e0] sm:$0xff]  ;;  %v883_v13 = vld [vmem:[#allocation2 + $0x1e8] sm:$0xff] }
 0x2ae   :  { %v951_v19 = vrot.slane %v937_v18, %v2376_v24  ;;  %v1180_v47 = vrot.slane %v1152_v38, %v2376_v24  ;;  %v1954_v36 = vpack.c.bf16 %v873_v32, %v872_v31  ;;  %v1009_v59 = vrot.slane %v1002_v33, %v2376_v24 }
 0x2af   :  { %v1000_v27 = vrot.slane %v986_v16, %v2376_v24  ;;  %v1181_v48 = vcombine.low %v1159_v41, %v1166_v49  ;;  %v1957_v2 = vpack.c.bf16 %v875_v44, %v874_v37  ;;  %v1960_v6 = vpack.c.bf16 %v877_v63, %v876_v62 }
 0x2b0   :  { %v952_v30 = vcombine.low %v944_v11, %v951_v19  ;;  %v1182_v55 = vcombine.low %v1173_v54, %v1180_v47  ;;  %v1016_v3 = vrot.slane %v1009_v59, %v2376_v24  ;;  %v1963_v53 = vpack.c.bf16 %v879_v8, %v878_v7 }
 0x2b1   :  { %v1001_v40 = vcombine.low %v993_v26, %v1000_v27  ;;  %v1189_v58 = vrot.slane %v1181_v48, %v2376_v24  ;;  %v1103_v10 = vcombine.low %v2403_v39, %v2422_v60  ;;  %v1101_v51 = vcombine.low %v2395_v43, %v2407_v45  ;;  %v885_v45 = vld [vmem:[#allocation2 + $0x1f8] sm:$0xff] }
 0x2b2   :  { %1772 = vmatmul.mubr.f32.vlgmr.msra.gmra.mrb[6].mxu0 %v952_v30  ;;  %v1196_v61 = vrot.slane %v1182_v55, %v2376_v24  ;;  %v1102_v15 = vcombine.low %v2398_v52, %v2411_v46  ;;  %v1966_v12 = vpack.c.bf16 %v881_v9, %v880_v14  ;;  %v1100_v17 = vcombine.low %v2383_v35, %v2392_v42  ;;  %v884_v52 = vld [vmem:[#allocation2 + $0x1f0] sm:$0xff] }
 0x2b3   :  { %1952 = vmatpush3.bf16.msra.mxu0 %v1951_v20  ;;  %1774 = vmatprep.mubr.msk.f32.mxu0 %vm2062_vm0, %v2063_v1  ;;  %v1131_v18 = vrot.slane %v1103_v10, %v2376_v24  ;;  %v1117_v56 = vrot.slane %v1101_v51, %v2376_v24  ;;  %v1969_v43 = vpack.c.bf16 %v883_v13, %v882_v50  ;;  %v1327_v7 = vsub.s32 4, %v2185_v22 }
 0x2b4   :  { %1953 = vmatprep.subr.bf16.mxu0 %v2061_v0  ;;  %v1197_v5 = vcombine.low %v1189_v58, %v1196_v61  ;;  %v1124_v39 = vrot.slane %v1102_v15, %v2376_v24  ;;  %v1110_v46 = vrot.slane %v1100_v17, %v2376_v24  ;;  %v1972_v11 = vpack.c.bf16 %v885_v45, %v884_v52 }
 0x2b5   :  { %v1198_v20 = vcombine.low %v2418_v57, %v2431_v4  ;;  %v1339_v10 = vsub.s32 5, %v2185_v22  ;;  %v1353_v51 = vadd.s32 1, %v2185_v22 }
 0x2b6   :  { %1775 = vmatmul.mubr.f32.gmra.mrb[8].mxu0 %v1001_v40  ;;  %v1133_v60 = vcombine.low %v1124_v39, %v1131_v18  ;;  %v1132_v16 = vcombine.low %v1110_v46, %v1117_v56  ;;  %v1350_v56 = vand.u32 127, %v155_v21  ;;  %v1351_v39 = vmul.u32 9, %v2185_v22 }
 0x2b7   :  { %1955 = vmatpush3.bf16.msra.mxu0 %v1954_v36  ;;  %1777 = vmatprep.mubr.msk.f32.mxu0 %vm2062_vm0, %v2063_v1  ;;  %v1205_v25 = vrot.slane %v1198_v20, %v2376_v24 }
 0x2b8   :  { %1956 = vmatprep.subr.bf16.mxu0 %v2061_v0  ;;  %v1147_v35 = vrot.slane %v1133_v60, %v2376_v24  ;;  %v1140_v42 = vrot.slane %v1132_v16, %v2376_v24  ;;  %vm1352_vm10 = vcmp.ge.s32.totalorder %v1350_v56, %v1351_v39 }
 0x2b9   :  { %v1212_v26 = vrot.slane %v1205_v25, %v2376_v24 }
 0x2ba   :  { %1778 = vmatmul.mubr.f32.gmra.mrb[10].mxu0 %v1016_v3  ;;  %v1148_v19 = vcombine.low %v1140_v42, %v1147_v35 }
 0x2bb   :  { %1958 = vmatpush3.bf16.msra.mxu0 %v1957_v2  ;;  %1812 = vmatprep.mubr.msk.f32.mxu0 %vm2062_vm0, %v2063_v1 }
 0x2bc   :  { %1959 = vmatprep.subr.bf16.mxu0 %v2061_v0 }
 0x2bf   :  { %1961 = vmatpush3.bf16.msra.mxu0 %v1960_v6 }
 0x2c0   :  { %1962 = vmatprep.subr.bf16.mxu0 %v2061_v0 }
 0x2c3   :  { %1964 = vmatpush3.bf16.msra.mxu0 %v1963_v53 }
 0x2c4   :  { %1965 = vmatprep.subr.bf16.mxu0 %v2061_v0 }
 0x2c7   :  { %1967 = vmatpush3.bf16.msra.mxu0 %v1966_v12 }
 0x2c8   :  { %1968 = vmatprep.subr.bf16.mxu0 %v2061_v0 }
 0x2cb   :  { %1970 = vmatpush3.bf16.msra.mxu0 %v1969_v43  ;;  %v1354_v43 = vmul.u32 9, %v1353_v51 }
 0x2cc   :  { %1971 = vmatprep.subr.bf16.mxu0 %v2061_v0 }
 0x2cd   :  { %vm1355_vm11 = vcmp.lt.s32.totalorder %v1350_v56, %v1354_v43 }
 0x2ce   :  { %vm1356_vm12 = vmand %vm1352_vm10, %vm1355_vm11 }
 0x2cf   :  { %1973 = vmatpush3.bf16.msra.mxu0 %v1972_v11 }
 0x2d0   :  { %1974 = vmatprep.subr.bf16.mxu0 %v2061_v0 }
 0x2d2   :  { %1813 = vmatmul.mubr.f32.vlgmr.msra.gmra.mrb[6].mxu0 %v1148_v19 }
 0x2d3   :  { %1815 = vmatprep.mubr.msk.f32.mxu0 %vm2062_vm0, %v2063_v1 }
 0x2d6   :  { %1816 = vmatmul.mubr.f32.gmra.mrb[8].mxu0 %v1197_v5 }
 0x2d7   :  { %1818 = vmatprep.mubr.msk.f32.mxu0 %vm2062_vm0, %v2063_v1 }
 0x2da   :  { %1819 = vmatmul.mubr.f32.gmra.mrb[10].mxu0 %v1212_v26 }
 0x2db   :  { %1827 = vmatprep.mubr.msk.f32.mxu0 %vm2062_vm0, %v2063_v1 }
 0x3a5   :  { %v1282_v27 = vpop.f32.mrb[6].mxu0 }
 0x3a6   :  { %v1814_v57 = vpop.f32.mrb[7].mxu0  ;;  %v1307_v0 = vmul.f32 %v1282_v27, %v1282_v27 }
 0x3a9   :  { %v1287_v4 = vpop.f32.mrb[8].mxu0 }
 0x3aa   :  { %v1296_v28 = vadd.f32 %v1287_v4, %v1282_v27  ;;  %v1308_v29 = vmul.f32 %v1287_v4, %v1287_v4  ;;  %v1817_v30 = vpop.f32.mrb[9].mxu0 }
 0x3ac   :  { %v1310_v31 = vadd.f32 %v1308_v29, %v1307_v0 }
 0x3ad   :  { %v1292_v32 = vpop.f32.mrb[10].mxu0 }
 0x3ae   :  { %v1298_v33 = vsel %vm1297_vm9, %v1292_v32, 0.0  ;;  %v1309_v34 = vmul.f32 %v1292_v32, %v1292_v32  ;;  %v1820_v38 = vpop.f32.mrb[11].mxu0 }
 0x3af   :  { %v1299_v40 = vadd.f32 %v1298_v33, %v1296_v28 }
 0x3b0   :  { %v1311_v24 = vsel %vm1297_vm9, %v1309_v34, 0.0 }
 0x3b1   :  { %v1300_v41 = vrot.slane %v1299_v40, 4  ;;  %v1312_v49 = vadd.f32 %v1311_v24, %v1310_v31 }
 0x3b3   :  { %v1301_v54 = vadd.f32 %v1300_v41, %v1299_v40  ;;  %v1313_v47 = vrot.slane %v1312_v49, 4 }
 0x3b5   :  { %v1302_v36 = vrot.slane %v1301_v54, 2  ;;  %v1314_v59 = vadd.f32 %v1313_v47, %v1312_v49 }
 0x3b7   :  { %v1303_v37 = vadd.f32 %v1302_v36, %v1301_v54  ;;  %v1315_v44 = vrot.slane %v1314_v59, 2 }
 0x3b9   :  { %v1304_v48 = vrot.slane %v1303_v37, 1  ;;  %v1316_v55 = vadd.f32 %v1315_v44, %v1314_v59 }
 0x3bb   :  { %v1305_v58 = vadd.f32 %v1304_v48, %v1303_v37  ;;  %v1317_v61 = vrot.slane %v1316_v55, 1 }
 0x3bd   :  { %v1306_v2 = vmul.f32 0.055555556, %v1305_v58  ;;  %v1318_v3 = vadd.f32 %v1317_v61, %v1316_v55 }
 0x3bf   :  { %v1319_v62 = vmul.f32 0.055555556, %v1318_v3  ;;  %v1320_v63 = vmul.f32 %v1306_v2, %v1306_v2 }
 0x3c1   :  { %v1321_v5 = vsub.f32 %v1319_v62, %v1320_v63 }
 0x3c3   :  { %v1322_v6 = vadd.f32 0.001, %v1321_v5 }
 0x3c5   :  { %2008 = vrsqrt.f32 %v1322_v6 }
 0x3cf   :  { %v2009_v8 = vpop.eup %2008 }
 0x3d0   :  { %v1324_v53 = vmul.f32 %v2009_v8, %v2187_v23 }
 0x3d2   :  { %v1328_v14 = vrot.slane %v1324_v53, %v1327_v7  ;;  %v1332_v9 = vmul.f32 %v1324_v53, %v1306_v2 }
 0x3d4   :  { %v1331_v15 = vmul.f32 %v1328_v14, %v1292_v32  ;;  %v1334_v12 = vrot.slane %v1332_v9, 7  ;;  %v1329_v50 = vmul.f32 %v1328_v14, %v1282_v27  ;;  %v1330_v13 = vmul.f32 %v1328_v14, %v1287_v4 }
 0x3d6   :  { %v1336_v17 = vsub.f32 %v2187_v23, %v1334_v12  ;;  %v1357_v23 = vsel %vm1356_vm12, 0.11111111, %v2063_v1 }
 0x3d8   :  { %v1340_v18 = vrot.slane %v1336_v17, %v1339_v10 }
 0x3da   :  { %v1343_v52 = vadd.f32 %v1340_v18, %v1331_v15  ;;  %v1341_v45 = vadd.f32 %v1340_v18, %v1329_v50  ;;  %v1342_v46 = vadd.f32 %v1340_v18, %v1330_v13 }
 0x3dc   :  { %v1344_v60 = vmax.f32 %v1341_v45, 0.0  ;;  %v1345_v16 = vmax.f32 %v1342_v46, 0.0  ;;  %v1346_v35 = vmax.f32 %v1343_v52, 0.0 }
 0x3de   :  { %v1975_v11 = vpack.c.bf16 %v1345_v16, %v1344_v60 }
 0x3e0   :  { %1976 = vmatpush3.bf16.msra.mxu0 %v1975_v11 }
 0x3e1   :  { %1825 = vmatprep.subr.mxu0 %v2063_v1 }
 0x3e4   :  { %1826 = vmatpush3.msk.msra.mxu0 %vm1297_vm9, %v1346_v35 }
 0x3e5   :  { %1828 = vmatmul.mubr.msk.f32.vlgmr.msra.gmra.mrb[12].mxu0 %vm1358_vm13, %v1357_v23 }
 0x4b8   :  { %v1431_v21 = vpop.f32.mrb[12].mxu0 }
 0x4b9   :  { %1435 = vst [vmem:[#allocation5] sm:$0x3] %v1431_v21  ;;  %v1829_v22 = vpop.f32.mrb[13].mxu0 }
 0x4ba   :  { %2043 = shalt.err (!%p2040_p12)
}
 0x4bb   :  { %s2044_s11 = scalar_lea.hbm %s2523_s3, 32 }
 0x4bc   :  { %p2045_p13 = scmp.ne.s32.totalorder %s2523_s3, %s2044_s11  ;;  %p2048_p0 = scmp.lt.u32.totalorder %s2044_s11, %s2523_s3 }
 0x4be   :  { %p2050_p1 = pnand %p2048_p0, %p2045_p13 }
 0x4c0   :  { %2053 = shalt.err (!%p2050_p1)
}
 0x4c1   :  { %1445 = dma.vmem_to_hbm [thread:$0]  %s1443_s7, 32, %s2523_s3, [#allocation4]  }
 0x4c2   :  { %2056 = dma.done.wait [#allocation4], 32  }
 0x4c3   :  { %2057 = vsyncadd [#allocation4], 4294967264 }
 0x4c4   :  { %1449 = vsyncpa [#allocation3], 1 }
 0x4c5   :  { %1450 = vsyncpa [#allocation4], 1 }

</bundles_post_ra>
